<compile_context>
chip_gen: v7x
topology: tpu7x:2x2x1
jax: 0.10.0
libtpu: 0.0.40
codegen_flags: <defaults>
</compile_context>

<pallas_src>
import functools

import jax
import jax.numpy as jnp
from jax.experimental import pallas as pl
from jax.experimental.pallas import tpu as pltpu

LANE = 128  # pad the class dimension to a full lane width for dense stores


def mood_classifier_kernel(ids_ref,   # SMEM (B, S) int32 (scalar-prefetched)
                           emb_ref,   # VMEM (V, D) f32
                           w1_ref,    # VMEM (D, H) f32
                           b1_ref,    # VMEM (1, H) f32
                           w2_ref,    # VMEM (H, LANE) f32, cols >= n_classes are 0
                           b2_ref,    # VMEM (1, LANE) f32, lanes >= n_classes are 0
                           out_ref,   # VMEM (B, LANE) f32
                           mean_ref,  # VMEM scratch (B, D) f32
                           *, n_classes):
    B, S = ids_ref.shape
    D = emb_ref.shape[1]
    inv_s = jnp.float32(1.0 / S)

    # ---- Embedding gather + sequence mean --------------------------------
    # ids are scalars in SMEM; each one addresses a row of the VMEM embedding
    # table.  Sum the S gathered rows per batch element and scale by 1/S
    # (== torch.sum(dim=1, keepdims=True) / x.shape[1]).
    # B*S is tiny and static here, so fully unroll; for larger shapes this
    # would become a lax.fori_loop / grid axis over B.
    for b in range(B):
        acc = jnp.zeros((1, D), jnp.float32)
        for s in range(S):
            tok = ids_ref[b, s]                      # scalar token id (SMEM read)
            acc = acc + emb_ref[pl.ds(tok, 1), :]    # (1, D) dynamic row gather
        mean_ref[pl.ds(b, 1), :] = acc * inv_s

    mean_emb = mean_ref[...]                         # (B, D)

    # ---- Linear(D, H) + ReLU ----------------------------------------------
    h = jnp.dot(mean_emb, w1_ref[...],
                preferred_element_type=jnp.float32) + b1_ref[...]
    h = jnp.maximum(h, 0.0)

    # ---- Linear(H, n_classes), padded to LANE output columns ---------------
    logits = jnp.dot(h, w2_ref[...],
                     preferred_element_type=jnp.float32) + b2_ref[...]

    # ---- LogSoftmax over the n_classes valid lanes --------------------------
    lane = jax.lax.broadcasted_iota(jnp.int32, logits.shape, 1)
    valid = lane < n_classes
    masked = jnp.where(valid, logits, -jnp.inf)      # padded lanes ignored
    m = jnp.max(masked, axis=1, keepdims=True)
    shifted = masked - m                             # -inf in padded lanes
    denom = jnp.sum(jnp.exp(shifted), axis=1, keepdims=True)
    out_ref[...] = shifted - jnp.log(denom)          # lane-dense (B, LANE) store


def mood_classifier_forward(ids, emb, w1, b1, w2, b2):
    B, S = ids.shape
    V, D = emb.shape
    H = w1.shape[1]
    n_classes = w2.shape[1]

    # Lane-dense epilogue: zero-pad the last linear's output dim to LANE.
    w2_pad = jnp.zeros((H, LANE), jnp.float32).at[:, :n_classes].set(w2)
    b2_pad = jnp.zeros((1, LANE), jnp.float32).at[0, :n_classes].set(b2)

    vmem = pl.BlockSpec(memory_space=pltpu.MemorySpace.VMEM)

    cost = pl.CostEstimate(
        flops=B * S * D                # gather accumulation + mean
              + 2 * B * D * H          # Linear(D, H)
              + 2 * B * H * LANE       # Linear(H, LANE)
              + 6 * B * LANE,          # log-softmax elementwise
        transcendentals=B * (LANE + 1),          # exp + log
        bytes_accessed=4 * (B * S + V * D + D * H + H
                            + H * LANE + LANE + B * LANE),
    )

    grid_spec = pltpu.PrefetchScalarGridSpec(
        num_scalar_prefetch=1,                   # ids -> SMEM, available up front
        grid=(),
        in_specs=[vmem] * 5,                     # emb, w1, b1, w2_pad, b2_pad
        out_specs=vmem,
        scratch_shapes=[pltpu.VMEM((B, D), jnp.float32)],
    )

    out_padded = pl.pallas_call(
        functools.partial(mood_classifier_kernel, n_classes=n_classes),
        out_shape=jax.ShapeDtypeStruct((B, LANE), jnp.float32),
        grid_spec=grid_spec,
        compiler_params=pltpu.CompilerParams(
            vmem_limit_bytes=64 * 1024 * 1024),
        cost_estimate=cost,
    )(ids, emb, w1, b1.reshape(1, -1), w2_pad, b2_pad)

    return out_padded[:, :n_classes]


def reference_forward(ids, emb, w1, b1, w2, b2):
    """Pure-JAX reference matching the PyTorch module exactly."""
    e = emb[ids]                                        # (B, S, D)
    x = jnp.sum(e, axis=1, keepdims=True) / e.shape[1]  # (B, 1, D)
    x = jnp.maximum(x @ w1 + b1, 0.0)                   # (B, 1, H)
    x = (x @ w2 + b2).reshape(-1, w2.shape[1])          # (B, 6)
    return jax.nn.log_softmax(x, axis=1)


if __name__ == "__main__":
    vocab_size, dim_embed, n_units = 64, 32, 32
    batch, seq = 2, 8

    key = jax.random.PRNGKey(0)
    k_ids, k_emb, k_w1, k_b1, k_w2, k_b2 = jax.random.split(key, 6)

    ids = jax.random.randint(k_ids, (batch, seq), 0, vocab_size, dtype=jnp.int32)

    # Deterministic parameter init (PyTorch-style scales, synthetic values).
    emb = jax.random.normal(k_emb, (vocab_size, dim_embed), jnp.float32)
    lim1 = 1.0 / jnp.sqrt(dim_embed)
    w1 = jax.random.uniform(k_w1, (dim_embed, n_units), jnp.float32, -lim1, lim1)
    b1 = jax.random.uniform(k_b1, (n_units,), jnp.float32, -lim1, lim1)
    lim2 = 1.0 / jnp.sqrt(n_units)
    w2 = jax.random.uniform(k_w2, (n_units, 6), jnp.float32, -lim2, lim2)
    b2 = jax.random.uniform(k_b2, (6,), jnp.float32, -lim2, lim2)

    out = mood_classifier_forward(ids, emb, w1, b1, w2, b2)
    out = jax.block_until_ready(out)

    ref = reference_forward(ids, emb, w1, b1, w2, b2)
    assert out.shape == (batch, 6)
    assert jnp.allclose(out, ref, atol=1e-5, rtol=1e-5), "mismatch vs reference"

    print("KERNEL_OK")
</pallas_src>

<mosaic_0001>
module attributes {stable_mosaic.version = 11 : i64} {
  func.func @mood_classifier_kernel(%arg0: memref<2x8xi32, #tpu.memory_space<smem>>, %arg1: memref<64x32xf32, #tpu.memory_space<vmem>>, %arg2: memref<32x32xf32, #tpu.memory_space<vmem>>, %arg3: memref<1x32xf32, #tpu.memory_space<vmem>>, %arg4: memref<32x128xf32, #tpu.memory_space<vmem>>, %arg5: memref<1x128xf32, #tpu.memory_space<vmem>>, %arg6: memref<2x128xf32, #tpu.memory_space<vmem>>, %arg7: memref<2x32xf32, #tpu.memory_space<vmem>>) attributes {dimension_semantics = [], scalar_prefetch = 1 : i64, scratch_operands = 1 : i64, tpu.core_type = #tpu.core_type<tc>} {
    %cst = arith.constant 0.000000e+00 : f32
    %0 = vector.broadcast %cst : f32 to vector<1x32xf32>
    %c0 = arith.constant 0 : index
    %c0_0 = arith.constant 0 : index
    %1 = memref.load %arg0[%c0, %c0_0] : memref<2x8xi32, #tpu.memory_space<smem>>
    %2 = arith.index_cast %1 : i32 to index
    %c0_1 = arith.constant 0 : index
    %3 = vector.load %arg1[%2, %c0_1] : memref<64x32xf32, #tpu.memory_space<vmem>>, vector<1x32xf32>
    %4 = arith.addf %0, %3 : vector<1x32xf32>
    %c0_2 = arith.constant 0 : index
    %c1 = arith.constant 1 : index
    %5 = memref.load %arg0[%c0_2, %c1] : memref<2x8xi32, #tpu.memory_space<smem>>
    %6 = arith.index_cast %5 : i32 to index
    %c0_3 = arith.constant 0 : index
    %7 = vector.load %arg1[%6, %c0_3] : memref<64x32xf32, #tpu.memory_space<vmem>>, vector<1x32xf32>
    %8 = arith.addf %4, %7 : vector<1x32xf32>
    %c0_4 = arith.constant 0 : index
    %c2 = arith.constant 2 : index
    %9 = memref.load %arg0[%c0_4, %c2] : memref<2x8xi32, #tpu.memory_space<smem>>
    %10 = arith.index_cast %9 : i32 to index
    %c0_5 = arith.constant 0 : index
    %11 = vector.load %arg1[%10, %c0_5] : memref<64x32xf32, #tpu.memory_space<vmem>>, vector<1x32xf32>
    %12 = arith.addf %8, %11 : vector<1x32xf32>
    %c0_6 = arith.constant 0 : index
    %c3 = arith.constant 3 : index
    %13 = memref.load %arg0[%c0_6, %c3] : memref<2x8xi32, #tpu.memory_space<smem>>
    %14 = arith.index_cast %13 : i32 to index
    %c0_7 = arith.constant 0 : index
    %15 = vector.load %arg1[%14, %c0_7] : memref<64x32xf32, #tpu.memory_space<vmem>>, vector<1x32xf32>
    %16 = arith.addf %12, %15 : vector<1x32xf32>
    %c0_8 = arith.constant 0 : index
    %c4 = arith.constant 4 : index
    %17 = memref.load %arg0[%c0_8, %c4] : memref<2x8xi32, #tpu.memory_space<smem>>
    %18 = arith.index_cast %17 : i32 to index
    %c0_9 = arith.constant 0 : index
    %19 = vector.load %arg1[%18, %c0_9] : memref<64x32xf32, #tpu.memory_space<vmem>>, vector<1x32xf32>
    %20 = arith.addf %16, %19 : vector<1x32xf32>
    %c0_10 = arith.constant 0 : index
    %c5 = arith.constant 5 : index
    %21 = memref.load %arg0[%c0_10, %c5] : memref<2x8xi32, #tpu.memory_space<smem>>
    %22 = arith.index_cast %21 : i32 to index
    %c0_11 = arith.constant 0 : index
    %23 = vector.load %arg1[%22, %c0_11] : memref<64x32xf32, #tpu.memory_space<vmem>>, vector<1x32xf32>
    %24 = arith.addf %20, %23 : vector<1x32xf32>
    %c0_12 = arith.constant 0 : index
    %c6 = arith.constant 6 : index
    %25 = memref.load %arg0[%c0_12, %c6] : memref<2x8xi32, #tpu.memory_space<smem>>
    %26 = arith.index_cast %25 : i32 to index
    %c0_13 = arith.constant 0 : index
    %27 = vector.load %arg1[%26, %c0_13] : memref<64x32xf32, #tpu.memory_space<vmem>>, vector<1x32xf32>
    %28 = arith.addf %24, %27 : vector<1x32xf32>
    %c0_14 = arith.constant 0 : index
    %c7 = arith.constant 7 : index
    %29 = memref.load %arg0[%c0_14, %c7] : memref<2x8xi32, #tpu.memory_space<smem>>
    %30 = arith.index_cast %29 : i32 to index
    %c0_15 = arith.constant 0 : index
    %31 = vector.load %arg1[%30, %c0_15] : memref<64x32xf32, #tpu.memory_space<vmem>>, vector<1x32xf32>
    %32 = arith.addf %28, %31 : vector<1x32xf32>
    %cst_16 = arith.constant 1.250000e-01 : f32
    %33 = vector.broadcast %cst_16 : f32 to vector<1x32xf32>
    %34 = arith.mulf %32, %33 : vector<1x32xf32>
    %c0_17 = arith.constant 0 : index
    %c0_18 = arith.constant 0 : index
    %35 = vector.load %arg7[%c0_17, %c0_18] : memref<2x32xf32, #tpu.memory_space<vmem>>, vector<1x32xf32>
    tpu.vector_store %arg7[%c0_17, %c0_18], %34 {strides = array<i32>} : memref<2x32xf32, #tpu.memory_space<vmem>>, vector<1x32xf32>,
    %cst_19 = arith.constant 0.000000e+00 : f32
    %36 = vector.broadcast %cst_19 : f32 to vector<1x32xf32>
    %c1_20 = arith.constant 1 : index
    %c0_21 = arith.constant 0 : index
    %37 = memref.load %arg0[%c1_20, %c0_21] : memref<2x8xi32, #tpu.memory_space<smem>>
    %38 = arith.index_cast %37 : i32 to index
    %c0_22 = arith.constant 0 : index
    %39 = vector.load %arg1[%38, %c0_22] : memref<64x32xf32, #tpu.memory_space<vmem>>, vector<1x32xf32>
    %40 = arith.addf %36, %39 : vector<1x32xf32>
    %c1_23 = arith.constant 1 : index
    %c1_24 = arith.constant 1 : index
    %41 = memref.load %arg0[%c1_23, %c1_24] : memref<2x8xi32, #tpu.memory_space<smem>>
    %42 = arith.index_cast %41 : i32 to index
    %c0_25 = arith.constant 0 : index
    %43 = vector.load %arg1[%42, %c0_25] : memref<64x32xf32, #tpu.memory_space<vmem>>, vector<1x32xf32>
    %44 = arith.addf %40, %43 : vector<1x32xf32>
    %c1_26 = arith.constant 1 : index
    %c2_27 = arith.constant 2 : index
    %45 = memref.load %arg0[%c1_26, %c2_27] : memref<2x8xi32, #tpu.memory_space<smem>>
    %46 = arith.index_cast %45 : i32 to index
    %c0_28 = arith.constant 0 : index
    %47 = vector.load %arg1[%46, %c0_28] : memref<64x32xf32, #tpu.memory_space<vmem>>, vector<1x32xf32>
    %48 = arith.addf %44, %47 : vector<1x32xf32>
    %c1_29 = arith.constant 1 : index
    %c3_30 = arith.constant 3 : index
    %49 = memref.load %arg0[%c1_29, %c3_30] : memref<2x8xi32, #tpu.memory_space<smem>>
    %50 = arith.index_cast %49 : i32 to index
    %c0_31 = arith.constant 0 : index
    %51 = vector.load %arg1[%50, %c0_31] : memref<64x32xf32, #tpu.memory_space<vmem>>, vector<1x32xf32>
    %52 = arith.addf %48, %51 : vector<1x32xf32>
    %c1_32 = arith.constant 1 : index
    %c4_33 = arith.constant 4 : index
    %53 = memref.load %arg0[%c1_32, %c4_33] : memref<2x8xi32, #tpu.memory_space<smem>>
    %54 = arith.index_cast %53 : i32 to index
    %c0_34 = arith.constant 0 : index
    %55 = vector.load %arg1[%54, %c0_34] : memref<64x32xf32, #tpu.memory_space<vmem>>, vector<1x32xf32>
    %56 = arith.addf %52, %55 : vector<1x32xf32>
    %c1_35 = arith.constant 1 : index
    %c5_36 = arith.constant 5 : index
    %57 = memref.load %arg0[%c1_35, %c5_36] : memref<2x8xi32, #tpu.memory_space<smem>>
    %58 = arith.index_cast %57 : i32 to index
    %c0_37 = arith.constant 0 : index
    %59 = vector.load %arg1[%58, %c0_37] : memref<64x32xf32, #tpu.memory_space<vmem>>, vector<1x32xf32>
    %60 = arith.addf %56, %59 : vector<1x32xf32>
    %c1_38 = arith.constant 1 : index
    %c6_39 = arith.constant 6 : index
    %61 = memref.load %arg0[%c1_38, %c6_39] : memref<2x8xi32, #tpu.memory_space<smem>>
    %62 = arith.index_cast %61 : i32 to index
    %c0_40 = arith.constant 0 : index
    %63 = vector.load %arg1[%62, %c0_40] : memref<64x32xf32, #tpu.memory_space<vmem>>, vector<1x32xf32>
    %64 = arith.addf %60, %63 : vector<1x32xf32>
    %c1_41 = arith.constant 1 : index
    %c7_42 = arith.constant 7 : index
    %65 = memref.load %arg0[%c1_41, %c7_42] : memref<2x8xi32, #tpu.memory_space<smem>>
    %66 = arith.index_cast %65 : i32 to index
    %c0_43 = arith.constant 0 : index
    %67 = vector.load %arg1[%66, %c0_43] : memref<64x32xf32, #tpu.memory_space<vmem>>, vector<1x32xf32>
    %68 = arith.addf %64, %67 : vector<1x32xf32>
    %cst_44 = arith.constant 1.250000e-01 : f32
    %69 = vector.broadcast %cst_44 : f32 to vector<1x32xf32>
    %70 = arith.mulf %68, %69 : vector<1x32xf32>
    %c1_45 = arith.constant 1 : index
    %c0_46 = arith.constant 0 : index
    %71 = vector.load %arg7[%c1_45, %c0_46] : memref<2x32xf32, #tpu.memory_space<vmem>>, vector<1x32xf32>
    tpu.vector_store %arg7[%c1_45, %c0_46], %70 {strides = array<i32>} : memref<2x32xf32, #tpu.memory_space<vmem>>, vector<1x32xf32>,
    %c0_47 = arith.constant 0 : index
    %c0_48 = arith.constant 0 : index
    %72 = vector.load %arg7[%c0_47, %c0_48] : memref<2x32xf32, #tpu.memory_space<vmem>>, vector<2x32xf32>
    %c0_49 = arith.constant 0 : index
    %c0_50 = arith.constant 0 : index
    %73 = vector.load %arg2[%c0_49, %c0_50] : memref<32x32xf32, #tpu.memory_space<vmem>>, vector<32x32xf32>
    %cst_51 = arith.constant dense<0.000000e+00> : vector<2x32xf32>
    %74 = tpu.matmul %72, %73, %cst_51 {dimension_numbers = #tpu.dot_dimension_numbers<[1], [0], [0], [1], [0, 0, 1, 1], [], []>} : vector<2x32xf32>, vector<32x32xf32>, vector<2x32xf32> -> vector<2x32xf32>
    %c0_52 = arith.constant 0 : index
    %c0_53 = arith.constant 0 : index
    %75 = vector.load %arg3[%c0_52, %c0_53] : memref<1x32xf32, #tpu.memory_space<vmem>>, vector<1x32xf32>
    %76 = vector.broadcast %75 : vector<1x32xf32> to vector<2x32xf32>
    %77 = arith.addf %74, %76 : vector<2x32xf32>
    %cst_54 = arith.constant 0.000000e+00 : f32
    %78 = vector.broadcast %cst_54 : f32 to vector<2x32xf32>
    %79 = arith.maximumf %77, %78 : vector<2x32xf32>
    %c0_55 = arith.constant 0 : index
    %c0_56 = arith.constant 0 : index
    %80 = vector.load %arg4[%c0_55, %c0_56] : memref<32x128xf32, #tpu.memory_space<vmem>>, vector<32x128xf32>
    %cst_57 = arith.constant dense<0.000000e+00> : vector<2x128xf32>
    %81 = tpu.matmul %79, %80, %cst_57 {dimension_numbers = #tpu.dot_dimension_numbers<[1], [0], [0], [1], [0, 0, 1, 1], [], []>} : vector<2x32xf32>, vector<32x128xf32>, vector<2x128xf32> -> vector<2x128xf32>
    %c0_58 = arith.constant 0 : index
    %c0_59 = arith.constant 0 : index
    %82 = vector.load %arg5[%c0_58, %c0_59] : memref<1x128xf32, #tpu.memory_space<vmem>>, vector<1x128xf32>
    %83 = vector.broadcast %82 : vector<1x128xf32> to vector<2x128xf32>
    %84 = arith.addf %81, %83 : vector<2x128xf32>
    %85 = tpu.iota {dimensions = array<i32: 1>} : vector<2x128xi32>
    %c6_i32 = arith.constant 6 : i32
    %86 = vector.broadcast %c6_i32 : i32 to vector<2x128xi32>
    %87 = arith.cmpi slt, %85, %86 : vector<2x128xi32>
    %cst_60 = arith.constant 0xFF800000 : f32
    %88 = vector.broadcast %cst_60 : f32 to vector<2x128xf32>
    %89 = arith.select %87, %84, %88 : vector<2x128xi1>, vector<2x128xf32>
    %cst_61 = arith.constant dense<0xFF800000> : vector<2xf32>
    %90 = vector.multi_reduction <maximumf>, %89, %cst_61 [1] : vector<2x128xf32> to vector<2xf32>
    %91 = vector.shape_cast %90 : vector<2xf32> to vector<2x1xf32>
    %92 = vector.broadcast %91 : vector<2x1xf32> to vector<2x128xf32>
    %93 = arith.subf %89, %92 : vector<2x128xf32>
    %94 = math.exp %93 : vector<2x128xf32>
    %cst_62 = arith.constant dense<0.000000e+00> : vector<2xf32>
    %95 = vector.multi_reduction <add>, %94, %cst_62 [1] : vector<2x128xf32> to vector<2xf32>
    %96 = vector.shape_cast %95 : vector<2xf32> to vector<2x1xf32>
    %97 = math.log %96 : vector<2x1xf32>
    %98 = vector.broadcast %97 : vector<2x1xf32> to vector<2x128xf32>
    %99 = arith.subf %93, %98 : vector<2x128xf32>
    %c0_63 = arith.constant 0 : index
    %c0_64 = arith.constant 0 : index
    %100 = vector.load %arg6[%c0_63, %c0_64] : memref<2x128xf32, #tpu.memory_space<vmem>>, vector<2x128xf32>
    tpu.vector_store %arg6[%c0_63, %c0_64], %99 {strides = array<i32>} : memref<2x128xf32, #tpu.memory_space<vmem>>, vector<2x128xf32>,
    return
  }
}

</mosaic_0001>

<bundles_post_ra>
// kernel: tpu_custom_call.1
= control target key start
LH: loop header
LB: loop body
LE: loop exit
PB: predicated region body
PF: predicated region fallthrough
CT: control target
= control target key end

     0   :  { %s780_s0 = inlined_call_operand.hbm [shape: s32[2,8], index: 0, kind: input, shape index: {}]   ;;  %s781_s1 = inlined_call_operand.hbm [shape: f32[64,32], index: 1, kind: input, shape index: {}]   ;;  %s782_s2 = inlined_call_operand.hbm [shape: f32[32,32], index: 2, kind: input, shape index: {}]   ;;  %s783_s3 = inlined_call_operand.hbm [shape: f32[1,32], index: 3, kind: input, shape index: {}]   ;;  %s784_s4 = inlined_call_operand.hbm [shape: f32[32,128], index: 4, kind: input, shape index: {}]   ;;  %s785_s5 = inlined_call_operand.hbm [shape: f32[1,128], index: 5, kind: input, shape index: {}]   ;;  %s786_s6 = inlined_call_operand.hbm [shape: f32[2,128], index: 6, kind: output, shape index: {}]  }
   0x1   :  { %s460_s23 = scalar_lea.hbm %s780_s0, 32 }
   0x2   :  { %p461_p0 = scmp.ne.s32.totalorder %s780_s0, %s460_s23  ;;  %p464_p1 = scmp.lt.u32.totalorder %s460_s23, %s780_s0 }
   0x4   :  { %p466_p2 = pnand %p464_p1, %p461_p0 }
   0x6   :  { %469 = shalt.err (!%p466_p2)  }
   0x7   :  { %s612_s28 = smov [#allocation4]  }
   0x8   :  { %12 = dma.hbm_to_smem %s780_s0, 32, %s612_s28, [#allocation3] }
   0x9   :  { %602 = dma.done.wait [#allocation3], 32 }
   0xa   :  { %603 = vsyncadd [#allocation3], 4294967264 }
   0xb   :  { %14 = sfence }
   0xc   :  { %15 = vsyncpa [#allocation6], 0 }
   0xd   :  { %16 = vsyncpa [#allocation9], 0 }
   0xe   :  { %17 = vsyncpa [#allocation12], 0 }
   0xf   :  { %18 = vsyncpa [#allocation7], 0  ;;  %s613_s7 = smov [#allocation8]   ;;  %s614_s9 = smov [#allocation11]  }
  0x10   :  { %s36_s8 = sshll.u32 %s613_s7, 4  ;;  %s58_s10 = sshll.u32 %s614_s9, 4  ;;  %s37_s8 = int_to_ptr.vmem [resolvable:$true] %s36_s8  ;;  %s671_s10 = int_to_ptr.vmem [resolvable:$true] %s58_s10 }
  0x11   :  { %s470_s13 = scalar_lea.hbm %s782_s2, 512 }
  0x12   :  { %p471_p3 = scmp.ne.s32.totalorder %s782_s2, %s470_s13  ;;  %p474_p4 = scmp.lt.u32.totalorder %s470_s13, %s782_s2 }
  0x14   :  { %p476_p5 = pnand %p474_p4, %p471_p3 }
  0x16   :  { %479 = shalt.err (!%p476_p5)
}
  0x17   :  { %s480_s17 = scalar_lea.vmem %s37_s8, 512  ;;  %p485_p7 = scmp.lt.s32.totalorder %s37_s8, %s37_s8 }
  0x18   :  { %p481_p6 = scmp.ne.s32.totalorder %s37_s8, %s480_s17  ;;  %p486_p8 = scmp.lt.s32.totalorder %s480_s17, %s480_s17 }
  0x1a   :  { %p487_p9 = por %p486_p8, %p485_p7 }
  0x1c   :  { %p488_p10 = pnand %p487_p9, %p481_p6 }
  0x1e   :  { %491 = shalt.err (!%p488_p10)
}
  0x1f   :  { %s615_s18 = smov 128   ;;  %s616_s19 = smov 8  }
  0x20   :  { %42 = dma.hbm_to_vmem [thread:$0]  %s782_s2, 512, %s37_s8, [#allocation9], %s615_s18, %s615_s18, %s616_s19  }
  0x21   :  { %s492_s24 = scalar_lea.hbm %s784_s4, 512 }
  0x22   :  { %p493_p11 = scmp.ne.s32.totalorder %s784_s4, %s492_s24  ;;  %p496_p12 = scmp.lt.u32.totalorder %s492_s24, %s784_s4 }
  0x24   :  { %p498_p13 = pnand %p496_p12, %p493_p11 }
  0x26   :  { %501 = shalt.err (!%p498_p13)
}
  0x27   :  { %s502_s29 = scalar_lea.vmem %s671_s10, 512  ;;  %p507_p1 = scmp.lt.s32.totalorder %s671_s10, %s671_s10 }
  0x28   :  { %p503_p0 = scmp.ne.s32.totalorder %s671_s10, %s502_s29  ;;  %p508_p2 = scmp.lt.s32.totalorder %s502_s29, %s502_s29 }
  0x2a   :  { %p509_p3 = por %p508_p2, %p507_p1 }
  0x2c   :  { %p510_p4 = pnand %p509_p3, %p503_p0 }
  0x2e   :  { %513 = shalt.err (!%p510_p4)
}
  0x2f   :  { %64 = dma.hbm_to_vmem [thread:$0]  %s784_s4, 512, %s671_s10, [#allocation12], %s615_s18, %s615_s18, %s616_s19  }
  0x30   :  { %s617_s7 = smov [#allocation5]   ;;  %s618_s9 = smov [#allocation10]  }
  0x31   :  { %s24_s8 = sshll.u32 %s617_s7, 4  ;;  %s49_s11 = sshll.u32 %s618_s9, 4  ;;  %s25_s8 = int_to_ptr.vmem [resolvable:$true] %s24_s8  ;;  %s50_s11 = int_to_ptr.vmem [resolvable:$true] %s49_s11 }
  0x32   :  { %s514_s14 = scalar_lea.hbm %s781_s1, 1024 }
  0x33   :  { %p515_p5 = scmp.ne.s32.totalorder %s781_s1, %s514_s14  ;;  %p518_p6 = scmp.lt.u32.totalorder %s514_s14, %s781_s1 }
  0x35   :  { %p520_p7 = pnand %p518_p6, %p515_p5 }
  0x37   :  { %523 = shalt.err (!%p520_p7)
}
  0x38   :  { %s524_s4 = scalar_lea.vmem %s25_s8, 1024  ;;  %p529_p9 = scmp.lt.s32.totalorder %s25_s8, %s25_s8 }
  0x39   :  { %p525_p8 = scmp.ne.s32.totalorder %s25_s8, %s524_s4  ;;  %p530_p10 = scmp.lt.s32.totalorder %s524_s4, %s524_s4 }
  0x3b   :  { %p531_p11 = por %p530_p10, %p529_p9 }
  0x3d   :  { %p532_p12 = pnand %p531_p11, %p525_p8 }
  0x3f   :  { %535 = shalt.err (!%p532_p12)
}
  0x40   :  { %30 = dma.hbm_to_vmem [thread:$0]  %s781_s1, 1024, %s25_s8, [#allocation6], %s615_s18, %s615_s18, %s616_s19  }
  0x41   :  { %s536_s23 = scalar_lea.hbm %s783_s3, 16 }
  0x42   :  { %p537_p13 = scmp.ne.s32.totalorder %s783_s3, %s536_s23  ;;  %p540_p0 = scmp.lt.u32.totalorder %s536_s23, %s783_s3 }
  0x44   :  { %p542_p1 = pnand %p540_p0, %p537_p13 }
  0x46   :  { %545 = shalt.err (!%p542_p1)
}
  0x47   :  { %s546_s28 = scalar_lea.vmem %s50_s11, 16  ;;  %s550_s29 = scalar_lea.vmem %s50_s11, 32 }
  0x48   :  { %p547_p2 = scmp.ne.s32.totalorder %s50_s11, %s546_s28  ;;  %p551_p3 = scmp.lt.s32.totalorder %s50_s11, %s50_s11 }
  0x49   :  { %p552_p4 = scmp.lt.s32.totalorder %s550_s29, %s546_s28 }
  0x4b   :  { %p553_p5 = por %p552_p4, %p551_p3 }
  0x4d   :  { %p554_p6 = pnand %p553_p5, %p547_p2 }
  0x4f   :  { %557 = shalt.err (!%p554_p6)
}
  0x50   :  { %52 = dma.hbm_to_vmem [thread:$0]  %s783_s3, 16, %s50_s11, [#allocation9]  }
  0x51   :  { %s619_s19 = smov [#allocation13]   ;;  %s558_s8 = scalar_lea.hbm %s785_s5, 16 }
  0x52   :  { %s71_s2 = sshll.u32 %s619_s19, 4  ;;  %p559_p7 = scmp.ne.s32.totalorder %s785_s5, %s558_s8  ;;  %s72_s2 = int_to_ptr.vmem [resolvable:$true] %s71_s2 }
  0x53   :  { %p562_p8 = scmp.lt.u32.totalorder %s558_s8, %s785_s5 }
  0x55   :  { %p564_p9 = pnand %p562_p8, %p559_p7 }
  0x57   :  { %567 = shalt.err (!%p564_p9)
}
  0x58   :  { %s568_s0 = scalar_lea.vmem %s72_s2, 16  ;;  %s572_s3 = scalar_lea.vmem %s72_s2, 32 }
  0x59   :  { %p569_p10 = scmp.ne.s32.totalorder %s72_s2, %s568_s0  ;;  %p573_p11 = scmp.lt.s32.totalorder %s72_s2, %s72_s2 }
  0x5a   :  { %p574_p12 = scmp.lt.s32.totalorder %s572_s3, %s568_s0 }
  0x5c   :  { %p575_p13 = por %p574_p12, %p573_p11 }
  0x5e   :  { %p576_p0 = pnand %p575_p13, %p569_p10 }
  0x60   :  { %579 = shalt.err (!%p576_p0)
}
  0x61   :  { %74 = dma.hbm_to_vmem [thread:$0]  %s785_s5, 16, %s72_s2, [#allocation12]  }
  0x62   :  { %604 = dma.done.wait [#allocation6], 1024  }
  0x63   :  { %605 = vsyncadd [#allocation6], 4294966272 }
  0x64   :  { %606 = dma.done.wait [#allocation9], 528  }
  0x65   :  { %607 = vsyncadd [#allocation9], 4294966768 }
  0x66   :  { %608 = dma.done.wait [#allocation12], 528  }
  0x67   :  { %609 = vsyncadd [#allocation12], 4294966768  ;;  %v620_v0 = vmov 0.0|0.0   ;;  %vm621_vm0 = vmmov 0   ;;  %v622_v1 = vmov 0.0   ;;  %s90_s16 = sld [smem:[#allocation4]]  ;;  %v330_v52 = vlaneseq }
  0x68   :  { %432 = vmatprep.subr.bf16.mxu0 %v620_v0  ;;  %418 = vmatprep.mubr.msk.f32.mxu0 %vm621_vm0, %v622_v1  ;;  %s381_s17 = sld [smem:[#allocation4 + $0x1]]  ;;  %s382_s4 = sld [smem:[#allocation4 + $0x2]]  ;;  %v160_v2 = vld [vmem:[#allocation8] sm:$0xff]  ;;  %v161_v3 = vld [vmem:[#allocation8 + $0x8] sm:$0xff]  ;;  %v162_v4 = vld [vmem:[#allocation8 + $0x10] sm:$0xff]  ;;  %vm123_vm1 = vcmask 253952  }
  0x69   :  { %s383_s10 = sld [smem:[#allocation4 + $0x3]]  ;;  %438 = vmatprep.subr.bf16.mxu1 %v620_v0  ;;  %429 = vmatprep.mubr.msk.f32.mxu1 %vm621_vm0, %v622_v1  ;;  %s747_s20 = sld [smem:[#allocation4 + $0x4]]  ;;  %v433_v5 = vpack.c.bf16 %v161_v3, %v160_v2  ;;  %v163_v6 = vld [vmem:[#allocation8 + $0x18] sm:$0xff]  ;;  %v246_v11 = vld [vmem:[#allocation11] sm:$0xff]  ;;  %v247_v12 = vld [vmem:[#allocation11 + $0x8] sm:$0xff]  ;;  %vm171_vm2 = vcmask 261120  }
  0x6a   :  { %s749_s5 = sld [smem:[#allocation4 + $0x5]]  ;;  %s751_s21 = sld [smem:[#allocation4 + $0x6]]  ;;  %v436_v13 = vpack.c.bf16 %v163_v6, %v162_v4  ;;  %v439_v15 = vpack.c.bf16 %v247_v12, %v246_v11  ;;  %v248_v44 = vld [vmem:[#allocation11 + $0x10] sm:$0xff]  ;;  %v249_v45 = vld [vmem:[#allocation11 + $0x18] sm:$0xff]  ;;  %v331_v53 = vand.u32 127, %v330_v52  ;;  %vm334_vm4 = vcmask 1041408  }
  0x6b   :  { %s753_s22 = sld [smem:[#allocation4 + $0x7]]  ;;  %s388_s23 = sld [smem:[#allocation4 + $0x80]]  ;;  %434 = vmatpush3.bf16.msra.mxu0 %v433_v5  ;;  %v442_v46 = vpack.c.bf16 %v249_v45, %v248_v44  ;;  %v396_v47 = vld [vmem:[#allocation10] ss:$0 sm:$0xff]  ;;  %v398_v54 = vld [vmem:[#allocation13] ss:$0 sm:$0xff] }
  0x6c   :  { %s755_s24 = sld [smem:[#allocation4 + $0x81]]  ;;  %s757_s25 = sld [smem:[#allocation4 + $0x82]]  ;;  %435 = vmatprep.subr.bf16.mxu0 %v620_v0  ;;  %440 = vmatpush3.bf16.msra.mxu1 %v439_v15  ;;  %vm332_vm3 = vcmp.lt.s32.totalorder %v331_v53, 6 }
  0x6d   :  { %s759_s26 = sld [smem:[#allocation4 + $0x83]]  ;;  %s91_s27 = scalar_lea.vmem [#allocation5], %s90_s16  ;;  %441 = vmatprep.subr.bf16.mxu1 %v620_v0 }
  0x6e   :  { %v92_v7 = vld [vmem:[%s91_s27] sm:$0x1]  ;;  %s95_s28 = scalar_lea.vmem [#allocation5], %s381_s17  ;;  %s99_s29 = scalar_lea.vmem [#allocation5], %s382_s4 }
  0x6f   :  { %v96_v8 = vld [vmem:[%s95_s28] sm:$0x1]  ;;  %s103_s1 = scalar_lea.vmem [#allocation5], %s383_s10  ;;  %s107_s18 = scalar_lea.vmem [#allocation5], %s747_s20  ;;  %437 = vmatpush3.bf16.msra.mxu0 %v436_v13 }
  0x70   :  { %v97_v9 = vadd.f32 %v96_v8, %v92_v7  ;;  %v100_v10 = vld [vmem:[%s99_s29] sm:$0x1]  ;;  %s111_s7 = scalar_lea.vmem [#allocation5], %s749_s5  ;;  %s392_s8 = sld [smem:[#allocation4 + $0x84]]  ;;  %443 = vmatpush3.bf16.msra.mxu1 %v442_v46 }
  0x71   :  { %v104_v14 = vld [vmem:[%s103_s1] sm:$0x1]  ;;  %s126_s19 = scalar_lea.vmem [#allocation5], %s388_s23  ;;  %s393_s9 = sld [smem:[#allocation4 + $0x85]] }
  0x72   :  { %v101_v16 = vadd.f32 %v100_v10, %v97_v9  ;;  %v108_v17 = vld [vmem:[%s107_s18] sm:$0x1]  ;;  %s130_s2 = scalar_lea.vmem [#allocation5], %s755_s24  ;;  %s134_s30 = scalar_lea.vmem [#allocation5], %s757_s25 }
  0x73   :  { %v127_v18 = vld [vmem:[%s126_s19] sm:$0x1]  ;;  %s138_s12 = scalar_lea.vmem [#allocation5], %s759_s26  ;;  %s394_s13 = sld [smem:[#allocation4 + $0x86]] }
  0x74   :  { %v105_v19 = vadd.f32 %v104_v14, %v101_v16  ;;  %v131_v20 = vld [vmem:[%s130_s2] sm:$0x1]  ;;  %s395_s14 = sld [smem:[#allocation4 + $0x87]]  ;;  %s115_s0 = scalar_lea.vmem [#allocation5], %s751_s21 }
  0x75   :  { %v135_v21 = vld [vmem:[%s134_s30] sm:$0x1]  ;;  %v132_v23 = vadd.f32 %v131_v20, %v127_v18  ;;  %s119_s3 = scalar_lea.vmem [#allocation5], %s753_s22  ;;  %s623_s4 = smov [#allocation14]  }
  0x76   :  { %v112_v22 = vld [vmem:[%s111_s7] sm:$0x1]  ;;  %v109_v24 = vadd.f32 %v108_v17, %v105_v19  ;;  %s142_s11 = scalar_lea.vmem [#allocation5], %s392_s8  ;;  %s354_s10 = sshll.u32 %s623_s4, 4  ;;  %s355_s10 = int_to_ptr.vmem [resolvable:$true] %s354_s10 }
  0x77   :  { %v139_v25 = vld [vmem:[%s138_s12] sm:$0x1]  ;;  %v136_v27 = vadd.f32 %v135_v21, %v132_v23  ;;  %s146_s15 = scalar_lea.vmem [#allocation5], %s393_s9  ;;  %s580_s20 = scalar_lea.vmem %s355_s10, 32 }
  0x78   :  { %v116_v26 = vld [vmem:[%s115_s0] sm:$0x1]  ;;  %v113_v28 = vadd.f32 %v112_v22, %v109_v24  ;;  %p581_p1 = scmp.ne.s32.totalorder %s355_s10, %s580_s20  ;;  %p585_p2 = scmp.lt.s32.totalorder %s355_s10, %s355_s10 }
  0x79   :  { %v120_v29 = vld [vmem:[%s119_s3] sm:$0x1]  ;;  %v140_v30 = vadd.f32 %v139_v25, %v136_v27  ;;  %s150_s16 = scalar_lea.vmem [#allocation5], %s394_s13  ;;  %p586_p3 = scmp.lt.s32.totalorder %s580_s20, %s580_s20 }
  0x7a   :  { %v117_v31 = vadd.f32 %v116_v26, %v113_v28  ;;  %v143_v33 = vld [vmem:[%s142_s11] sm:$0x1]  ;;  %s154_s17 = scalar_lea.vmem [#allocation5], %s395_s14 }
  0x7b   :  { %v147_v34 = vld [vmem:[%s146_s15] sm:$0x1]  ;;  %v144_v35 = vadd.f32 %v143_v33, %v140_v30  ;;  %p587_p4 = por %p586_p3, %p585_p2 }
  0x7c   :  { %v121_v32 = vadd.f32 %v120_v29, %v117_v31  ;;  %v151_v37 = vld [vmem:[%s150_s16] sm:$0x1] }
  0x7d   :  { %v148_v38 = vadd.f32 %v147_v34, %v144_v35  ;;  %v155_v39 = vld [vmem:[%s154_s17] sm:$0x1]  ;;  %p588_p5 = pnand %p587_p4, %p581_p1 }
  0x7e   :  { %v122_v36 = vmul.f32 0.125, %v121_v32 }
  0x7f   :  { %v152_v40 = vadd.f32 %v151_v37, %v148_v38 }
  0x80   :  { %124 = vst.msk [vmem:[#allocation2] sm:$0x1] %vm123_vm1, %v122_v36 }
  0x81   :  { %v156_v41 = vadd.f32 %v155_v39, %v152_v40 }
  0x83   :  { %v157_v42 = vmul.f32 0.125, %v156_v41 }
  0x85   :  { %158 = vst.msk [vmem:[#allocation2 + $0x1] sm:$0x1] %vm123_vm1, %v157_v42 }
  0x8c   :  { %v159_v43 = vld [vmem:[#allocation2] sm:$0x3] }
  0x8d   :  { %419 = vmatmul.mubr.msk.f32.vlgmr.msra.gmra.mrb[0].mxu0 %vm171_vm2, %v159_v43 }
 0x160   :  { %v241_v48 = vpop.f32.mrb[0].mxu0 }
 0x161   :  { %v242_v49 = vadd.f32 %v396_v47, %v241_v48  ;;  %v420_v50 = vpop.f32.mrb[1].mxu0 }
 0x163   :  { %v245_v51 = vmax.f32 %v242_v49, 0.0 }
 0x165   :  { %430 = vmatmul.mubr.msk.f32.vlgmr.msra.gmra.mrb[0].mxu1 %vm171_vm2, %v245_v51 }
 0x238   :  { %v326_v55 = vpop.f32.mrb[0].mxu1 }
 0x239   :  { %v327_v56 = vadd.f32 %v398_v54, %v326_v55  ;;  %v431_v57 = vpop.f32.mrb[1].mxu1 }
 0x23b   :  { %v333_v58 = vsel %vm332_vm3, %v327_v56, -inf }
 0x23c   :  { %v335_v59 = vsel %vm334_vm4, %v333_v58, -inf }
 0x23d   :  { %336 = vmax.xlane.f32.xlu0 %v335_v59 }
 0x2ca   :  { %v337_v60 = vpop.xlane.xlu0 %336 }
 0x2cb   :  { %v338_v61 = vsub.f32 %v333_v58, %v337_v60 }
 0x2cd   :  { %v339_v62 = vmul.f32 1.442695, %v338_v61 }
 0x2cf   :  { %456 = vpow2.f32 %v339_v62 }
 0x2d9   :  { %v457_v63 = vpop.eup %456 }
 0x2da   :  { %v341_v0 = vsel %vm334_vm4, %v457_v63, 0.0 }
 0x2db   :  { %342 = vadd.xlane.f32.xlu0 %v341_v0 }
 0x368   :  { %v343_v1 = vpop.xlane.xlu0 %342 }
 0x369   :  { %458 = vlog2.f32 %v343_v1 }
 0x373   :  { %v459_v2 = vpop.eup %458 }
 0x374   :  { %v345_v3 = vmul.f32 0.6931472, %v459_v2 }
 0x376   :  { %v346_v4 = vsub.f32 %v338_v61, %v345_v3 }
 0x378   :  { %347 = vst [vmem:[#allocation14] sm:$0x3] %v346_v4 }
 0x379   :  { %591 = shalt.err (!%p588_p5)
}
 0x37a   :  { %s592_s22 = scalar_lea.hbm %s786_s6, 32 }
 0x37b   :  { %p593_p6 = scmp.ne.s32.totalorder %s786_s6, %s592_s22  ;;  %p596_p7 = scmp.lt.u32.totalorder %s592_s22, %s786_s6 }
 0x37d   :  { %p598_p8 = pnand %p596_p7, %p593_p6 }
 0x37f   :  { %601 = shalt.err (!%p598_p8)
}
 0x380   :  { %357 = dma.vmem_to_hbm [thread:$0]  %s355_s10, 32, %s786_s6, [#allocation7]  }
 0x381   :  { %610 = dma.done.wait [#allocation7], 32  }
 0x382   :  { %611 = vsyncadd [#allocation7], 4294967264 }
 0x383   :  { %361 = vsyncpa [#allocation6], 1 }
 0x384   :  { %362 = vsyncpa [#allocation9], 1 }
 0x385   :  { %363 = vsyncpa [#allocation12], 1 }
 0x386   :  { %364 = vsyncpa [#allocation7], 1 }

</bundles_post_ra>
